<compile_context>
chip_gen: v7x
topology: tpu7x:2x2x1
jax: 0.10.0
libtpu: 0.0.40
codegen_flags: <defaults>
</compile_context>

<pallas_src>
import functools

import jax
import jax.numpy as jnp
from jax.experimental import pallas as pl
from jax.experimental.pallas import tpu as pltpu


def _round_up(x, m):
    return (x + m - 1) // m * m


def _complex_conv_kernel(x_ref, w_ref, b_ref, o_ref, *, K, W, C2):
    """One grid step = one batch element.

    x_ref: [1, Lp, C2]     bf16  flattened (h*W + w) image, channels = [re | im]
    w_ref: [K*K*C2, n2]    bf16  fused complex weight, rows ordered (ki, kj, part, c)
    b_ref: [1, n2]         f32   fused bias [b_re - b_im | b_re + b_im]
    o_ref: [1, M, n2]      f32   flattened output rows p = ho*W + wo
    """
    M, n2 = o_ref.shape[1], o_ref.shape[2]
    acc = jnp.zeros((M, n2), jnp.float32)
    # In-kernel im2col: K*K shifted slices of the flattened image, each contracted
    # over the 2*C_in channel axis on the MXU and accumulated in f32.
    for ki in range(K):
        for kj in range(K):
            off = ki * W + kj                       # static row shift
            kk = ki * K + kj
            patch = x_ref[0, pl.ds(off, M), :]      # [M, C2] bf16
            w_kk = w_ref[pl.ds(kk * C2, C2), :]     # [C2, n2] bf16
            acc += jnp.dot(patch, w_kk, preferred_element_type=jnp.float32)
    o_ref[0] = (acc + b_ref[...]).astype(o_ref.dtype)


def complex_conv2d(x, w_re, w_im, b_re, b_im):
    """x: [B, 2, C_in, H, W]; w_*: [C_out, C_in, K, K]; b_*: [C_out]."""
    B, two, C_in, H, W = x.shape
    assert two == 2
    C_out, _, K, _ = w_re.shape
    Ho, Wo = H - K + 1, W - K + 1
    C2, n2 = 2 * C_in, 2 * C_out
    M = Ho * W                                   # flat output rows (wo >= Wo discarded)
    Lp = _round_up(H * W + (K - 1) * (W + 1), 16)

    # --- single-pass input prep (no K*K patch blowup in HBM), bf16 stream ---
    xc = x.transpose(0, 3, 4, 1, 2).reshape(B, H * W, C2)        # [B, H*W, 2*C_in]
    xc = jnp.pad(xc, ((0, 0), (0, Lp - H * W), (0, 0))).astype(jnp.bfloat16)

    # --- fused complex weight: rows (ki, kj, part, c), cols (part_out, n) ---
    wre_t = jnp.transpose(w_re, (2, 3, 1, 0))                    # [K, K, C_in, C_out]
    wim_t = jnp.transpose(w_im, (2, 3, 1, 0))
    w_c = jnp.concatenate(
        [jnp.concatenate([wre_t, wim_t], axis=-1),               # x_re rows: [ w_re |  w_im]
         jnp.concatenate([-wim_t, wre_t], axis=-1)],             # x_im rows: [-w_im |  w_re]
        axis=2).reshape(K * K * C2, n2).astype(jnp.bfloat16)
    bias = jnp.concatenate([b_re - b_im, b_re + b_im]).reshape(1, n2).astype(jnp.float32)

    # --- generation-aware VMEM budget: double-buffered blocks + headroom,
    #     capped well below v7x's 64 MiB per-core VMEM ---
    bf16, f32 = 2, 4
    block_bytes = (Lp * C2 * bf16 + K * K * C2 * n2 * bf16 + n2 * f32 + M * n2 * f32)
    vmem_bytes = int(min(48 << 20, max(16 << 20, 16 * block_bytes)))

    kernel = functools.partial(_complex_conv_kernel, K=K, W=W, C2=C2)
    out = pl.pallas_call(
        kernel,
        out_shape=jax.ShapeDtypeStruct((B, M, n2), jnp.float32),
        grid=(B,),
        in_specs=[
            pl.BlockSpec((1, Lp, C2), lambda b: (b, 0, 0)),        # per-batch image
            pl.BlockSpec((K * K * C2, n2), lambda b: (0, 0)),      # weights (grid-invariant)
            pl.BlockSpec((1, n2), lambda b: (0, 0)),               # bias (grid-invariant)
        ],
        out_specs=pl.BlockSpec((1, M, n2), lambda b: (b, 0, 0)),   # unpadded writeback
        compiler_params=pltpu.CompilerParams(
            dimension_semantics=("parallel",),                     # 2 balanced tiles for v7x
            vmem_limit_bytes=vmem_bytes),
    )(xc, w_c, bias)

    # [B, Ho*W, 2*C_out] -> [B, 2, C_out, Ho, Wo]  (drop the wrap-around columns)
    out = out.reshape(B, Ho, W, 2, C_out)[:, :, :Wo]
    return out.transpose(0, 3, 4, 1, 2)


def _ref_complex_conv2d(x, w_re, w_im, b_re, b_im):
    """Pure-JAX f32 reference (NCHW, VALID), matching nn.Conv2d."""
    def conv(inp, w, b):
        y = jax.lax.conv_general_dilated(
            inp, w, window_strides=(1, 1), padding="VALID",
            dimension_numbers=("NCHW", "OIHW", "NCHW"),
            precision=jax.lax.Precision.HIGHEST)
        return y + b[None, :, None, None]
    real = conv(x[:, 0], w_re, b_re) - conv(x[:, 1], w_im, b_im)
    imag = conv(x[:, 1], w_re, b_re) + conv(x[:, 0], w_im, b_im)
    return jnp.stack((real, imag), axis=1)


if __name__ == "__main__":
    B, C_in, C_out, H, W, K = 2, 4, 8, 16, 16, 3

    key = jax.random.PRNGKey(0)
    kx, kwr, kwi, kbr, kbi = jax.random.split(key, 5)
    x = jax.random.normal(kx, (B, 2, C_in, H, W), dtype=jnp.float32)
    w_re = jax.random.normal(kwr, (C_out, C_in, K, K), dtype=jnp.float32) * 0.1
    w_im = jax.random.normal(kwi, (C_out, C_in, K, K), dtype=jnp.float32) * 0.1
    b_re = jax.random.normal(kbr, (C_out,), dtype=jnp.float32) * 0.1
    b_im = jax.random.normal(kbi, (C_out,), dtype=jnp.float32) * 0.1

    out = jax.jit(complex_conv2d)(x, w_re, w_im, b_re, b_im)
    out = jax.block_until_ready(out)

    ref = _ref_complex_conv2d(x, w_re, w_im, b_re, b_im)
    assert out.shape == (B, 2, C_out, H - K + 1, W - K + 1), out.shape
    max_err = float(jnp.max(jnp.abs(out - ref)))
    # bf16 operands / f32 accumulation -> looser tolerance than the pure-f32 run.
    assert jnp.allclose(out, ref, atol=5e-2, rtol=5e-2), (
        f"mismatch vs reference, max abs diff = {max_err}")

    print("KERNEL_OK")
</pallas_src>

<mosaic_0001>
module attributes {stable_mosaic.version = 11 : i64} {
  func.func @_complex_conv_kernel(%arg0: i32, %arg1: memref<1x304x8xbf16, #tpu.memory_space<vmem>>, %arg2: memref<72x16xbf16, #tpu.memory_space<vmem>>, %arg3: memref<1x16xf32, #tpu.memory_space<vmem>>, %arg4: memref<1x224x16xf32, #tpu.memory_space<vmem>>) attributes {dimension_semantics = [#tpu.dimension_semantics<parallel>], iteration_bounds = array<i64: 2>, scalar_prefetch = 0 : i64, scratch_operands = 0 : i64, tpu.core_type = #tpu.core_type<tc>, window_params = [{transform_indices = @transform_0, window_bounds = array<i64: 1, 304, 8>}, {pipeline_mode = #tpu.pipeline_mode<synchronous>, transform_indices = @transform_1, window_bounds = array<i64: 72, 16>}, {pipeline_mode = #tpu.pipeline_mode<synchronous>, transform_indices = @transform_2, window_bounds = array<i64: 1, 16>}, {transform_indices = @transform_3, window_bounds = array<i64: 1, 224, 16>}]} {
    %cst = arith.constant 0.000000e+00 : f32
    %0 = vector.broadcast %cst : f32 to vector<224x16xf32>
    %c0 = arith.constant 0 : index
    %c0_0 = arith.constant 0 : index
    %c0_1 = arith.constant 0 : index
    %1 = vector.load %arg1[%c0, %c0_0, %c0_1] : memref<1x304x8xbf16, #tpu.memory_space<vmem>>, vector<1x224x8xbf16>
    %2 = vector.shape_cast %1 : vector<1x224x8xbf16> to vector<224x8xbf16>
    %c0_2 = arith.constant 0 : index
    %c0_3 = arith.constant 0 : index
    %3 = vector.load %arg2[%c0_2, %c0_3] : memref<72x16xbf16, #tpu.memory_space<vmem>>, vector<8x16xbf16>
    %cst_4 = arith.constant dense<0.000000e+00> : vector<224x16xf32>
    %4 = tpu.matmul %2, %3, %cst_4 {dimension_numbers = #tpu.dot_dimension_numbers<[1], [0], [0], [1], [0, 0, 1, 1], [], []>} : vector<224x8xbf16>, vector<8x16xbf16>, vector<224x16xf32> -> vector<224x16xf32>
    %5 = arith.addf %0, %4 : vector<224x16xf32>
    %c0_5 = arith.constant 0 : index
    %c1 = arith.constant 1 : index
    %c0_6 = arith.constant 0 : index
    %6 = vector.load %arg1[%c0_5, %c1, %c0_6] : memref<1x304x8xbf16, #tpu.memory_space<vmem>>, vector<1x224x8xbf16>
    %7 = vector.shape_cast %6 : vector<1x224x8xbf16> to vector<224x8xbf16>
    %c8 = arith.constant 8 : index
    %c0_7 = arith.constant 0 : index
    %8 = vector.load %arg2[%c8, %c0_7] : memref<72x16xbf16, #tpu.memory_space<vmem>>, vector<8x16xbf16>
    %cst_8 = arith.constant dense<0.000000e+00> : vector<224x16xf32>
    %9 = tpu.matmul %7, %8, %cst_8 {dimension_numbers = #tpu.dot_dimension_numbers<[1], [0], [0], [1], [0, 0, 1, 1], [], []>} : vector<224x8xbf16>, vector<8x16xbf16>, vector<224x16xf32> -> vector<224x16xf32>
    %10 = arith.addf %5, %9 : vector<224x16xf32>
    %c0_9 = arith.constant 0 : index
    %c2 = arith.constant 2 : index
    %c0_10 = arith.constant 0 : index
    %11 = vector.load %arg1[%c0_9, %c2, %c0_10] : memref<1x304x8xbf16, #tpu.memory_space<vmem>>, vector<1x224x8xbf16>
    %12 = vector.shape_cast %11 : vector<1x224x8xbf16> to vector<224x8xbf16>
    %c16 = arith.constant 16 : index
    %c0_11 = arith.constant 0 : index
    %13 = vector.load %arg2[%c16, %c0_11] : memref<72x16xbf16, #tpu.memory_space<vmem>>, vector<8x16xbf16>
    %cst_12 = arith.constant dense<0.000000e+00> : vector<224x16xf32>
    %14 = tpu.matmul %12, %13, %cst_12 {dimension_numbers = #tpu.dot_dimension_numbers<[1], [0], [0], [1], [0, 0, 1, 1], [], []>} : vector<224x8xbf16>, vector<8x16xbf16>, vector<224x16xf32> -> vector<224x16xf32>
    %15 = arith.addf %10, %14 : vector<224x16xf32>
    %c0_13 = arith.constant 0 : index
    %c16_14 = arith.constant 16 : index
    %c0_15 = arith.constant 0 : index
    %16 = vector.load %arg1[%c0_13, %c16_14, %c0_15] : memref<1x304x8xbf16, #tpu.memory_space<vmem>>, vector<1x224x8xbf16>
    %17 = vector.shape_cast %16 : vector<1x224x8xbf16> to vector<224x8xbf16>
    %c24 = arith.constant 24 : index
    %c0_16 = arith.constant 0 : index
    %18 = vector.load %arg2[%c24, %c0_16] : memref<72x16xbf16, #tpu.memory_space<vmem>>, vector<8x16xbf16>
    %cst_17 = arith.constant dense<0.000000e+00> : vector<224x16xf32>
    %19 = tpu.matmul %17, %18, %cst_17 {dimension_numbers = #tpu.dot_dimension_numbers<[1], [0], [0], [1], [0, 0, 1, 1], [], []>} : vector<224x8xbf16>, vector<8x16xbf16>, vector<224x16xf32> -> vector<224x16xf32>
    %20 = arith.addf %15, %19 : vector<224x16xf32>
    %c0_18 = arith.constant 0 : index
    %c17 = arith.constant 17 : index
    %c0_19 = arith.constant 0 : index
    %21 = vector.load %arg1[%c0_18, %c17, %c0_19] : memref<1x304x8xbf16, #tpu.memory_space<vmem>>, vector<1x224x8xbf16>
    %22 = vector.shape_cast %21 : vector<1x224x8xbf16> to vector<224x8xbf16>
    %c32 = arith.constant 32 : index
    %c0_20 = arith.constant 0 : index
    %23 = vector.load %arg2[%c32, %c0_20] : memref<72x16xbf16, #tpu.memory_space<vmem>>, vector<8x16xbf16>
    %cst_21 = arith.constant dense<0.000000e+00> : vector<224x16xf32>
    %24 = tpu.matmul %22, %23, %cst_21 {dimension_numbers = #tpu.dot_dimension_numbers<[1], [0], [0], [1], [0, 0, 1, 1], [], []>} : vector<224x8xbf16>, vector<8x16xbf16>, vector<224x16xf32> -> vector<224x16xf32>
    %25 = arith.addf %20, %24 : vector<224x16xf32>
    %c0_22 = arith.constant 0 : index
    %c18 = arith.constant 18 : index
    %c0_23 = arith.constant 0 : index
    %26 = vector.load %arg1[%c0_22, %c18, %c0_23] : memref<1x304x8xbf16, #tpu.memory_space<vmem>>, vector<1x224x8xbf16>
    %27 = vector.shape_cast %26 : vector<1x224x8xbf16> to vector<224x8xbf16>
    %c40 = arith.constant 40 : index
    %c0_24 = arith.constant 0 : index
    %28 = vector.load %arg2[%c40, %c0_24] : memref<72x16xbf16, #tpu.memory_space<vmem>>, vector<8x16xbf16>
    %cst_25 = arith.constant dense<0.000000e+00> : vector<224x16xf32>
    %29 = tpu.matmul %27, %28, %cst_25 {dimension_numbers = #tpu.dot_dimension_numbers<[1], [0], [0], [1], [0, 0, 1, 1], [], []>} : vector<224x8xbf16>, vector<8x16xbf16>, vector<224x16xf32> -> vector<224x16xf32>
    %30 = arith.addf %25, %29 : vector<224x16xf32>
    %c0_26 = arith.constant 0 : index
    %c32_27 = arith.constant 32 : index
    %c0_28 = arith.constant 0 : index
    %31 = vector.load %arg1[%c0_26, %c32_27, %c0_28] : memref<1x304x8xbf16, #tpu.memory_space<vmem>>, vector<1x224x8xbf16>
    %32 = vector.shape_cast %31 : vector<1x224x8xbf16> to vector<224x8xbf16>
    %c48 = arith.constant 48 : index
    %c0_29 = arith.constant 0 : index
    %33 = vector.load %arg2[%c48, %c0_29] : memref<72x16xbf16, #tpu.memory_space<vmem>>, vector<8x16xbf16>
    %cst_30 = arith.constant dense<0.000000e+00> : vector<224x16xf32>
    %34 = tpu.matmul %32, %33, %cst_30 {dimension_numbers = #tpu.dot_dimension_numbers<[1], [0], [0], [1], [0, 0, 1, 1], [], []>} : vector<224x8xbf16>, vector<8x16xbf16>, vector<224x16xf32> -> vector<224x16xf32>
    %35 = arith.addf %30, %34 : vector<224x16xf32>
    %c0_31 = arith.constant 0 : index
    %c33 = arith.constant 33 : index
    %c0_32 = arith.constant 0 : index
    %36 = vector.load %arg1[%c0_31, %c33, %c0_32] : memref<1x304x8xbf16, #tpu.memory_space<vmem>>, vector<1x224x8xbf16>
    %37 = vector.shape_cast %36 : vector<1x224x8xbf16> to vector<224x8xbf16>
    %c56 = arith.constant 56 : index
    %c0_33 = arith.constant 0 : index
    %38 = vector.load %arg2[%c56, %c0_33] : memref<72x16xbf16, #tpu.memory_space<vmem>>, vector<8x16xbf16>
    %cst_34 = arith.constant dense<0.000000e+00> : vector<224x16xf32>
    %39 = tpu.matmul %37, %38, %cst_34 {dimension_numbers = #tpu.dot_dimension_numbers<[1], [0], [0], [1], [0, 0, 1, 1], [], []>} : vector<224x8xbf16>, vector<8x16xbf16>, vector<224x16xf32> -> vector<224x16xf32>
    %40 = arith.addf %35, %39 : vector<224x16xf32>
    %c0_35 = arith.constant 0 : index
    %c34 = arith.constant 34 : index
    %c0_36 = arith.constant 0 : index
    %41 = vector.load %arg1[%c0_35, %c34, %c0_36] : memref<1x304x8xbf16, #tpu.memory_space<vmem>>, vector<1x224x8xbf16>
    %42 = vector.shape_cast %41 : vector<1x224x8xbf16> to vector<224x8xbf16>
    %c64 = arith.constant 64 : index
    %c0_37 = arith.constant 0 : index
    %43 = vector.load %arg2[%c64, %c0_37] : memref<72x16xbf16, #tpu.memory_space<vmem>>, vector<8x16xbf16>
    %cst_38 = arith.constant dense<0.000000e+00> : vector<224x16xf32>
    %44 = tpu.matmul %42, %43, %cst_38 {dimension_numbers = #tpu.dot_dimension_numbers<[1], [0], [0], [1], [0, 0, 1, 1], [], []>} : vector<224x8xbf16>, vector<8x16xbf16>, vector<224x16xf32> -> vector<224x16xf32>
    %45 = arith.addf %40, %44 : vector<224x16xf32>
    %c0_39 = arith.constant 0 : index
    %c0_40 = arith.constant 0 : index
    %46 = vector.load %arg3[%c0_39, %c0_40] : memref<1x16xf32, #tpu.memory_space<vmem>>, vector<1x16xf32>
    %47 = vector.broadcast %46 : vector<1x16xf32> to vector<224x16xf32>
    %48 = arith.addf %45, %47 : vector<224x16xf32>
    %c0_41 = arith.constant 0 : index
    %c0_42 = arith.constant 0 : index
    %c0_43 = arith.constant 0 : index
    %49 = vector.load %arg4[%c0_41, %c0_42, %c0_43] : memref<1x224x16xf32, #tpu.memory_space<vmem>>, vector<1x224x16xf32>
    %50 = vector.shape_cast %49 : vector<1x224x16xf32> to vector<224x16xf32>
    %51 = vector.shape_cast %48 : vector<224x16xf32> to vector<1x224x16xf32>
    tpu.vector_store %arg4[%c0_41, %c0_42, %c0_43], %51 {strides = array<i32>} : memref<1x224x16xf32, #tpu.memory_space<vmem>>, vector<1x224x16xf32>,
    return
  }
  func.func @transform_0(%arg0: i32) -> (i32, i32, i32) {
    %c0_i32 = arith.constant 0 : i32
    %c0_i32_0 = arith.constant 0 : i32
    %c0_i32_1 = arith.constant 0 : i32
    return %arg0, %c0_i32, %c0_i32_0 : i32, i32, i32
  }
  func.func @transform_1(%arg0: i32) -> (i32, i32) {
    %c0_i32 = arith.constant 0 : i32
    %c0_i32_0 = arith.constant 0 : i32
    %c0_i32_1 = arith.constant 0 : i32
    return %c0_i32, %c0_i32_0 : i32, i32
  }
  func.func @transform_2(%arg0: i32) -> (i32, i32) {
    %c0_i32 = arith.constant 0 : i32
    %c0_i32_0 = arith.constant 0 : i32
    %c0_i32_1 = arith.constant 0 : i32
    return %c0_i32, %c0_i32_0 : i32, i32
  }
  func.func @transform_3(%arg0: i32) -> (i32, i32, i32) {
    %c0_i32 = arith.constant 0 : i32
    %c0_i32_0 = arith.constant 0 : i32
    %c0_i32_1 = arith.constant 0 : i32
    return %arg0, %c0_i32, %c0_i32_0 : i32, i32, i32
  }
}

</mosaic_0001>

<bundles_post_ra>
// kernel: complex_conv2d.1
= control target key start
LH: loop header
LB: loop body
LE: loop exit
PB: predicated region body
PF: predicated region fallthrough
CT: control target
= control target key end

     0   :  { %s4112_s12 = smov 0   ;;  %s4846_s0 = inlined_call_operand.vmem [shape: bf16[2,304,8], index: 0, kind: input, shape index: {}]   ;;  %s4847_s1 = inlined_call_operand.vmem [shape: bf16[72,16], index: 1, kind: input, shape index: {}]   ;;  %s4848_s2 = inlined_call_operand.vmem [shape: f32[1,16], index: 2, kind: input, shape index: {}]   ;;  %s4849_s3 = inlined_call_operand.vmem [shape: f32[2,224,16], index: 3, kind: output, shape index: {}]  }
   0x1 LB: > { %s3145_s13 = sadd.s32 4294967295, %s4090_s12   ;;  %p3149_p0 = scmp.ge.s32.totalorder %s4090_s12, 1  ;;  %s4090_s12 = sphi %s4112_s12, %s13_s12  }
   0x2   : > { %p137_p1 = scmp.lt.s32.totalorder %s4090_s12, 3 }
   0x4   : > { %p138_p2 = pnand %p3149_p0, %p137_p1 }
   0x5   : > { %vm436_vm0 = vcmask (!%p138_p2), 1043456   ;;  %v4123_v0 = vld [vmem:[%s4847_s1 + $0x10] sm:$0xf] (!%p138_p2)  ;;  %v202_v1 = vld [vmem:[%s4847_s1 + $0x4] sm:$0xf] (!%p138_p2)  ;;  %p161_p3 = scmp.lt.s32.totalorder (!%p138_p2), %s3145_s13, 1 }
   0x6   : > { %141 = sbr.rel (%p138_p2) target bundleno = 498 (0x1f2), region = 32  ;;  %3992 = vmatprep.subr.msk.bf16.mxu0 (!%p138_p2), %vm436_vm0, %v4123_v0  ;;  %3988 = vmatprep.subr.msk.bf16.mxu1 (!%p138_p2), %vm436_vm0, %v202_v1  ;;  %v4133_v2 = vsel (!%p138_p2), %vm436_vm0, %v4123_v0, 0  ;;  %v438_v3 = vsel (!%p138_p2), %vm436_vm0, %v202_v1, 0  ;;  %v1769_v4 = vld [vmem:[%s4847_s1 + $0x14] sm:$0xf] (!%p138_p2)  ;;  %vm393_vm2 = vcmask (!%p138_p2), 64512  }
   0x7   : > { %3613 = vmatpush3.bf16.msra.mxu0 (!%p138_p2), %v4133_v2  ;;  %3493 = vmatpush3.bf16.msra.mxu1 (!%p138_p2), %v438_v3  ;;  %v200_v5 = vld [vmem:[%s4847_s1] sm:$0xf] (!%p138_p2)  ;;  %vm276_vm1 = vsmask.f32 (!%p138_p2), 7424  ;;  %v4154_v6 = vsel (!%p138_p2), %vm436_vm0, %v1769_v4, 0  ;;  %vm766_vm3 = vcmask (!%p138_p2), 1046528  }
   0x8   : > { %3994 = vmatprep.subr.msk.bf16.mxu0 (!%p138_p2), %vm436_vm0, %v1769_v4  ;;  %3989 = vmatprep.subr.msk.bf16.mxu1 (!%p138_p2), %vm436_vm0, %v200_v5  ;;  %v614_v12 = vsel (!%p138_p2), %vm436_vm0, %v200_v5, 0  ;;  %v4200_v39 = vld [vmem:[%s4847_s1 + $0x8] sm:$0xf] (!%p138_p2)  ;;  %v4218_v53 = vld [vmem:[%s4847_s1 + $0x18] sm:$0xf] (!%p138_p2)  ;;  %vm3061_vm4 = vcmask (!%p138_p2), 130048  }
   0xd   : > { %s4851_s13 = smov (!%p161_p3, %s3145_s13), 1 }
   0xe   : > { %s3998_s22 = smul.u32 152, %s4851_s13 }
   0xf   : > { %s3999_s9 = smul.u32 224, %s4851_s13 }
  0x10   : > { %s4151_s25 = scalar_lea.vmem %s4846_s0, %s3998_s22 }
  0x11   : > { %v172_v7 = vld [vmem:[%s4151_s25] sm:$0xf]  ;;  %v4158_v8 = vld [vmem:[%s4151_s25 + $0x4] sm:$0xf]  ;;  %v4164_v10 = vld [vmem:[%s4151_s25 + $0x8] sm:$0xff]   ;;  %s4755_s16 = scalar_lea.vmem %s4849_s3, %s3999_s9 }
  0x12   : > { %v4161_v9 = vcombine.low %v172_v7, %v4158_v8  ;;  %v1331_v11 = vld [vmem:[%s4151_s25 + $0x8] sm:$0xf]  ;;  %v4169_v13 = vld [vmem:[%s4151_s25 + $0xc] sm:$0xf]  ;;  %v285_v16 = vshll.u32 %v4164_v10, 16  ;;  %v289_v17 = vshrl.u32 %v4164_v10, 16 }
  0x13   : > { %v4176_v18 = vld [vmem:[%s4151_s25 + $0x10] sm:$0xff]   ;;  %v3238_v20 = vcombine.low %v1331_v11, %v4169_v13  ;;  %v4186_v28 = vld [vmem:[%s4151_s25 + $0x18] sm:$0xff]   ;;  %v4193_v34 = vld [vmem:[%s4151_s25 + $0x20] sm:$0xff]  }
  0x14   : > { %v278_v14 = vshrl.u32 %v4161_v9, 16  ;;  %v280_v15 = vshll.u32 %v4161_v9, 16  ;;  %v4179_v19 = vld [vmem:[%s4151_s25 + $0x10] sm:$0xff]   ;;  %v287_v22 = vrot.slane %v285_v16, 1  ;;  %v1442_v23 = vshll.u32 %v4176_v18, 16  ;;  %v4189_v32 = vld [vmem:[%s4151_s25 + $0x18] sm:$0xff]  }
  0x15   : > { %v1446_v24 = vshrl.u32 %v4176_v18, 16  ;;  %v1435_v25 = vshrl.u32 %v3238_v20, 16  ;;  %v1437_v26 = vshll.u32 %v3238_v20, 16  ;;  %v293_v27 = vshll.u32 %v4179_v19, 16  ;;  %v4208_v48 = vld [vmem:[%s4151_s25 + $0x20] sm:$0xff]   ;;  %v4213_v52 = vld [vmem:[%s4151_s25 + $0x28] sm:$0xff]  }
  0x16   : > { %v282_v21 = vrot.slane %v280_v15, 1  ;;  %v291_v30 = vor.u32 %v289_v17, %v287_v22  ;;  %v1444_v31 = vrot.slane %v1442_v23, 1  ;;  %v297_v33 = vshrl.u32 %v4179_v19, 16  ;;  %v4224_v58 = vld [vmem:[%s4151_s25 + $0x28] sm:$0xff]   ;;  %v4238_v5 = vld [vmem:[%s4151_s25 + $0x30] sm:$0xff]   ;;  %v4253_v23 = vld [vmem:[%s4151_s25 + $0x38] sm:$0xff]  }
  0x17   : > { %v1439_v35 = vrot.slane %v1437_v26, 1  ;;  %v295_v36 = vrot.slane %v293_v27, 1  ;;  %v1450_v37 = vshll.u32 %v4186_v28, 16  ;;  %v1454_v38 = vshrl.u32 %v4186_v28, 16 }
  0x18   : > { %v283_v29 = vor.u32 %v282_v21, %v278_v14  ;;  %v1448_v41 = vor.u32 %v1446_v24, %v1444_v31  ;;  %v301_v42 = vshll.u32 %v4189_v32, 16  ;;  %v1458_v43 = vshll.u32 %v4193_v34, 16  ;;  %v4244_v14 = vld [vmem:[%s4151_s25 + $0x30] sm:$0xff]  }
  0x19   : > { %v1440_v44 = vor.u32 %v1439_v35, %v1435_v25  ;;  %v296_v45 = vsel %vm276_vm1, %v291_v30, %v295_v36  ;;  %v1452_v46 = vrot.slane %v1450_v37, 1  ;;  %v299_v47 = vor.u32 %v297_v33, %v295_v36  ;;  %v4257_v25 = vld [vmem:[%s4151_s25 + $0x38] sm:$0xff]   ;;  %v4266_v36 = vld [vmem:[%s4151_s25 + $0x40] sm:$0xff]  }
  0x1a   : > { %v288_v40 = vsel %vm276_vm1, %v283_v29, %v287_v22  ;;  %v303_v49 = vrot.slane %v301_v42, 1  ;;  %v1460_v50 = vrot.slane %v1458_v43, 1  ;;  %v305_v51 = vshrl.u32 %v4189_v32, 16 }
  0x1b   : > { %3494 = vmatprep.mubr.msk.bf16.mxu1 %vm393_vm2, %v288_v40  ;;  %v1445_v54 = vsel %vm276_vm1, %v1440_v44, %v1444_v31  ;;  %v1453_v55 = vsel %vm276_vm1, %v1448_v41, %v1452_v46  ;;  %v1456_v56 = vor.u32 %v1454_v38, %v1452_v46  ;;  %v309_v57 = vshll.u32 %v4208_v48, 16  ;;  %v4272_v41 = vld [vmem:[%s4151_s25 + $0x40] sm:$0xff]   ;;  %v4277_v46 = vld [vmem:[%s4151_s25 + $0x48] sm:$0xff]  }
  0x1c   : > { %3495 = vmatmul.mubr.msk.bf16.vlgmr.msra.gmra.mrb[0].mxu1 %vm393_vm2, %v296_v45  ;;  %3614 = vmatprep.mubr.msk.bf16.mxu0 %vm393_vm2, %v1445_v54  ;;  %v304_v59 = vsel %vm276_vm1, %v299_v47, %v303_v49  ;;  %v307_v60 = vor.u32 %v305_v51, %v303_v49  ;;  %v1462_v61 = vshrl.u32 %v4193_v34, 16  ;;  %v1466_v62 = vshll.u32 %v4213_v52, 16 }
  0x1d   : > { %3523 = vmatpush3.bf16.msra.mxu1 %v614_v12  ;;  %3615 = vmatmul.mubr.msk.bf16.vlgmr.msra.gmra.mrb[0].mxu0 %vm393_vm2, %v1453_v55  ;;  %v1461_v63 = vsel %vm276_vm1, %v1456_v56, %v1460_v50  ;;  %v311_v1 = vrot.slane %v309_v57, 1  ;;  %v313_v3 = vshrl.u32 %v4208_v48, 16  ;;  %v317_v4 = vshll.u32 %v4224_v58, 16  ;;  %v1768_v57 = vld [vmem:[%s4151_s25 + $0x8] sm:$0xe] }
  0x1e   : > { %3990 = vmatprep.subr.msk.bf16.mxu1 %vm436_vm0, %v4200_v39  ;;  %3498 = vmatprep.mubr.msk.bf16.mxu1 %vm393_vm2, %v304_v59  ;;  %v1464_v7 = vor.u32 %v1462_v61, %v1460_v50  ;;  %v1468_v11 = vrot.slane %v1466_v62, 1  ;;  %v1470_v12 = vshrl.u32 %v4213_v52, 16  ;;  %v321_v15 = vshrl.u32 %v4224_v58, 16  ;;  %v4282_v50 = vld [vmem:[%s4151_s25 + $0x48] sm:$0xff]  }
  0x1f   : > { %3643 = vmatpush3.bf16.msra.mxu0 %v4154_v6  ;;  %3618 = vmatprep.mubr.msk.bf16.mxu0 %vm393_vm2, %v1461_v63  ;;  %v312_v16 = vsel %vm276_vm1, %v307_v60, %v311_v1  ;;  %v315_v17 = vor.u32 %v313_v3, %v311_v1  ;;  %v319_v20 = vrot.slane %v317_v4, 1  ;;  %v1474_v21 = vshll.u32 %v4238_v5, 16  ;;  %v4295_v4 = vld [vmem:[%s4151_s25 + $0x50] sm:$0xff]  }
  0x20   : > { %3995 = vmatprep.subr.msk.bf16.mxu0 %vm436_vm0, %v4218_v53  ;;  %v1472_v6 = vor.u32 %v1470_v12, %v1468_v11  ;;  %v325_v22 = vshll.u32 %v4244_v14, 16  ;;  %v1478_v24 = vshrl.u32 %v4238_v5, 16  ;;  %v329_v29 = vshrl.u32 %v4244_v14, 16 }
  0x21   : > { %v320_v26 = vsel %vm276_vm1, %v315_v17, %v319_v20  ;;  %v1476_v27 = vrot.slane %v1474_v21, 1  ;;  %v1469_v30 = vsel %vm276_vm1, %v1464_v7, %v1468_v11  ;;  %v1482_v33 = vshll.u32 %v4253_v23, 16  ;;  %v4301_v17 = vld [vmem:[%s4151_s25 + $0x58] sm:$0xff]  }
  0x22   : > { %v327_v31 = vrot.slane %v325_v22, 1  ;;  %v333_v35 = vshll.u32 %v4257_v25, 16  ;;  %v323_v38 = vor.u32 %v321_v15, %v319_v20  ;;  %v1486_v40 = vshrl.u32 %v4253_v23, 16 }
  0x23   : > { %v1477_v37 = vsel %vm276_vm1, %v1472_v6, %v1476_v27  ;;  %v1484_v44 = vrot.slane %v1482_v33, 1  ;;  %v1490_v45 = vshll.u32 %v4266_v36, 16  ;;  %v1480_v47 = vor.u32 %v1478_v24, %v1476_v27 }
  0x24   : > { %3499 = vmatmul.mubr.msk.bf16.gmra.mrb[4].mxu1 %vm393_vm2, %v312_v16  ;;  %v331_v42 = vor.u32 %v329_v29, %v327_v31  ;;  %v335_v43 = vrot.slane %v333_v35, 1  ;;  %v341_v49 = vshll.u32 %v4272_v41, 16  ;;  %v328_v51 = vsel %vm276_vm1, %v323_v38, %v327_v31  ;;  %v4318_v35 = vld [vmem:[%s4151_s25 + $0x60] sm:$0xff]   ;;  %v4323_v38 = vld [vmem:[%s4151_s25 + $0x68] sm:$0xff]  }
  0x25   : > { %3502 = vmatprep.mubr.msk.bf16.mxu1 %vm393_vm2, %v320_v26  ;;  %3619 = vmatmul.mubr.msk.bf16.gmra.mrb[4].mxu0 %vm393_vm2, %v1469_v30  ;;  %v1488_v54 = vor.u32 %v1486_v40, %v1484_v44  ;;  %v1492_v55 = vrot.slane %v1490_v45, 1  ;;  %v337_v56 = vshrl.u32 %v4257_v25, 16  ;;  %v345_v60 = vshrl.u32 %v4272_v41, 16 }
  0x26   : > { %3622 = vmatprep.mubr.msk.bf16.mxu0 %vm393_vm2, %v1477_v37  ;;  %v336_v59 = vsel %vm276_vm1, %v331_v42, %v335_v43  ;;  %v349_v61 = vshll.u32 %v4277_v46, 16  ;;  %v1485_v62 = vsel %vm276_vm1, %v1480_v47, %v1484_v44  ;;  %v343_v63 = vrot.slane %v341_v49, 1 }
  0x27   : > { %v1494_v1 = vshrl.u32 %v4266_v36, 16  ;;  %v1498_v3 = vshll.u32 %v4282_v50, 16  ;;  %v1493_v7 = vsel %vm276_vm1, %v1488_v54, %v1492_v55  ;;  %v339_v11 = vor.u32 %v337_v56, %v335_v43 }
  0x28   : > { %v3267_v12 = vcombine.low %v1768_v57, %v4169_v13  ;;  %v347_v15 = vor.u32 %v345_v60, %v343_v63  ;;  %v351_v16 = vrot.slane %v349_v61, 1  ;;  %v357_v6 = vshll.u32 %v4295_v4, 16  ;;  %v4347_v61 = vld [vmem:[%s4847_s1 + $0x1c] sm:$0xf] }
  0x29   : > { %v1496_v20 = vor.u32 %v1494_v1, %v1492_v55  ;;  %v4305_v21 = vrot.slane %v1498_v3, 1  ;;  %v344_v22 = vsel %vm276_vm1, %v339_v11, %v343_v63  ;;  %v1774_v13 = vrot.slane %v4176_v18, 1  ;;  %v761_v11 = vld [vmem:[%s4151_s25] sm:$0xe] }
  0x2a   : > { %v1773_v24 = vrot.slane %v3267_v12, 1  ;;  %v353_v26 = vshrl.u32 %v4277_v46, 16  ;;  %v352_v27 = vsel %vm276_vm1, %v347_v15, %v351_v16  ;;  %v361_v29 = vshrl.u32 %v4295_v4, 16 }
  0x2b   : > { %v365_v30 = vshll.u32 %v4301_v17, 16  ;;  %v1501_v31 = vsel %vm276_vm1, %v1496_v20, %v4305_v21  ;;  %v359_v33 = vrot.slane %v357_v6, 1  ;;  %v1776_v43 = vrot.slane %v4186_v28, 1  ;;  %v4337_v28 = vld [vmem:[%s4151_s25 + $0x70] ss:$0 sps:$4 sm:$0x11]  }
  0x2c   : > { %3503 = vmatmul.mubr.msk.bf16.gmra.mrb[8].mxu1 %vm393_vm2, %v328_v51  ;;  %v1775_v18 = vsel %vm766_vm3, %v1773_v24, %v1774_v13  ;;  %v355_v37 = vor.u32 %v353_v26, %v351_v16  ;;  %v1778_v44 = vrot.slane %v4193_v34, 1  ;;  %v373_v45 = vshll.u32 %v4318_v35, 16 }
  0x2d   : > { %3506 = vmatprep.mubr.msk.bf16.mxu1 %vm393_vm2, %v336_v59  ;;  %3623 = vmatmul.mubr.msk.bf16.gmra.mrb[8].mxu0 %vm393_vm2, %v1485_v62  ;;  %v363_v40 = vor.u32 %v361_v29, %v359_v33  ;;  %v367_v42 = vrot.slane %v365_v30, 1  ;;  %v369_v49 = vshrl.u32 %v4301_v17, 16  ;;  %v381_v51 = vshll.u32 %v4323_v38, 16 }
  0x2e   : > { %3626 = vmatprep.mubr.msk.bf16.mxu0 %vm393_vm2, %v1493_v7  ;;  %v360_v47 = vsel %vm276_vm1, %v355_v37, %v359_v33  ;;  %v377_v55 = vshrl.u32 %v4318_v35, 16  ;;  %v768_v56 = vrot.slane %v4164_v10, 1  ;;  %v770_v57 = vrot.slane %v4179_v19, 1 }
  0x2f   : > { %v368_v54 = vsel %vm276_vm1, %v363_v40, %v367_v42  ;;  %v1777_v34 = vsel %vm766_vm3, %v1774_v13, %v1776_v43  ;;  %v2162_v59 = vsel %vm436_vm0, %v4218_v53, 0  ;;  %v375_v60 = vrot.slane %v373_v45, 1  ;;  %v4415_v45 = vld [vmem:[%s4151_s25 + $0x68] sm:$0xff]  }
  0x30   : > { %v1779_v62 = vsel %vm766_vm3, %v1776_v43, %v1778_v44  ;;  %v371_v63 = vor.u32 %v369_v49, %v367_v42  ;;  %v383_v1 = vrot.slane %v381_v51, 1  ;;  %v4354_v3 = vsel %vm766_vm3, %v768_v56, %v770_v57  ;;  %v4401_v42 = vld [vmem:[%s4151_s25 + $0x58] sm:$0xff]   ;;  %v4424_v51 = vld [vmem:[%s4151_s25 + $0x70] sm:$0xff]  }
  0x31   : > { %v379_v7 = vor.u32 %v377_v55, %v375_v60  ;;  %v1780_v53 = vrot.slane %v4213_v52, 1  ;;  %v3195_v12 = vcombine.low %v761_v11, %v4158_v8  ;;  %v1782_v15 = vrot.slane %v4238_v5, 1 }
  0x32   : > { %v385_v16 = vshrl.u32 %v4323_v38, 16  ;;  %v376_v20 = vsel %vm276_vm1, %v371_v63, %v375_v60  ;;  %v389_v6 = vshll.u32 %v4337_v28, 16  ;;  %v1786_v30 = vrot.slane %v4266_v36, 1  ;;  %v4039_v63 = vld [vmem:[%s4151_s25 + $0x10] sm:$0xff]  }
  0x33   : > { %v384_v24 = vsel %vm276_vm1, %v379_v7, %v383_v1  ;;  %v1781_v8 = vsel %vm766_vm3, %v1778_v44, %v1780_v53  ;;  %v1783_v5 = vsel %vm766_vm3, %v1780_v53, %v1782_v15  ;;  %v839_v37 = vsel %vm436_vm0, %v4200_v39, 0  ;;  %v4407_v44 = vld [vmem:[%s4151_s25 + $0x60] sm:$0xff]  }
  0x34   : > { %3507 = vmatmul.mubr.msk.bf16.gmra.mrb[12].mxu1 %vm393_vm2, %v344_v22  ;;  %v767_v22 = vrot.slane %v3195_v12, 1  ;;  %v387_v13 = vor.u32 %v385_v16, %v383_v1  ;;  %v391_v26 = vrot.slane %v389_v6, 1  ;;  %v1794_v39 = vrot.slane %v4407_v44, 1  ;;  %v4040_v1 = vld [vmem:[%s4151_s25 + $0x18] sm:$0xff]   ;;  %v4041_v7 = vld [vmem:[%s4151_s25 + $0x20] sm:$0xff]   ;;  %v4042_v12 = vld [vmem:[%s4151_s25 + $0x28] sm:$0xff]  }
  0x35   : > { %3510 = vmatprep.mubr.msk.bf16.mxu1 %vm393_vm2, %v352_v27  ;;  %3627 = vmatmul.mubr.msk.bf16.gmra.mrb[12].mxu0 %vm393_vm2, %v1501_v31  ;;  %v1784_v27 = vrot.slane %v4253_v23, 1  ;;  %v1788_v23 = vrot.slane %v4282_v50, 1  ;;  %v1798_v55 = vrot.slane %v4424_v51, 1  ;;  %v2599_v11 = vsel %vm436_vm0, %v4347_v61, 0  ;;  %v4461_v53 = vld [vmem:[%s4847_s1 + $0x20] sm:$0xf] }
  0x36   : > { %3644 = vmatprep.mubr.msk.bf16.mxu0 %vm393_vm2, %v1775_v18  ;;  %v4369_v52 = vsel %vm766_vm3, %v767_v22, %v768_v56  ;;  %v392_v29 = vsel %vm276_vm1, %v387_v13, %v391_v26  ;;  %v4386_v18 = vld [vmem:[%s4151_s25 + $0x50] sm:$0xff]   ;;  %v4431_v56 = vld [vmem:[%s4151_s25 + $0x78] ss:$0 sps:$4 sm:$0x11]   ;;  %v4046_v16 = vld [vmem:[%s4151_s25 + $0x40] sm:$0xff]   ;;  %v780_v26 = vrot.slane %v4257_v25, 1 }
  0x37   : > { %v1785_v31 = vsel %vm766_vm3, %v1782_v15, %v1784_v27  ;;  %v1787_v33 = vsel %vm766_vm3, %v1784_v27, %v1786_v30  ;;  %v1790_v36 = vrot.slane %v4386_v18, 1  ;;  %v1789_v40 = vsel %vm766_vm3, %v1786_v30, %v1788_v23  ;;  %v4044_v15 = vld [vmem:[%s4151_s25 + $0x38] sm:$0xff]  }
  0x38   : > { %v1800_v60 = vrot.slane %v4431_v56, 1 }
  0x39   : > { %v1791_v43 = vsel %vm766_vm3, %v1788_v23, %v1790_v36 }
  0x3c   : > { %3511 = vmatmul.mubr.msk.bf16.gmra.mrb[16].mxu1 %vm393_vm2, %v360_v47 }
  0x3d   : > { %3514 = vmatprep.mubr.msk.bf16.mxu1 %vm393_vm2, %v368_v54  ;;  %3645 = vmatmul.mubr.msk.bf16.vlgmr.msra.gmra.mrb[0].mxu0 %vm393_vm2, %v1777_v34  ;;  %v1796_v54 = vrot.slane %v4415_v45, 1 }
  0x3e   : > { %3673 = vmatpush3.bf16.msra.mxu0 %v2162_v59  ;;  %3648 = vmatprep.mubr.msk.bf16.mxu0 %vm393_vm2, %v1779_v62  ;;  %v1801_v62 = vsel %vm766_vm3, %v1798_v55, %v1800_v60 }
  0x3f   : > { %3996 = vmatprep.subr.msk.bf16.mxu0 %vm436_vm0, %v4347_v61  ;;  %v1797_v34 = vsel %vm766_vm3, %v1794_v39, %v1796_v54  ;;  %v1799_v59 = vsel %vm766_vm3, %v1796_v54, %v1798_v55  ;;  %v4043_v61 = vld [vmem:[%s4151_s25 + $0x30] sm:$0xff]  }
  0x44   : > { %3515 = vmatmul.mubr.msk.bf16.gmra.mrb[20].mxu1 %vm393_vm2, %v376_v20  ;;  %v772_v20 = vrot.slane %v4189_v32, 1 }
  0x45   : > { %3518 = vmatprep.mubr.msk.bf16.mxu1 %vm393_vm2, %v384_v24  ;;  %3649 = vmatmul.mubr.msk.bf16.gmra.mrb[4].mxu0 %vm393_vm2, %v1781_v8  ;;  %v4047_v24 = vld [vmem:[%s4151_s25 + $0x48] sm:$0xff]   ;;  %v776_v8 = vrot.slane %v4224_v58, 1 }
  0x46   : > { %3652 = vmatprep.mubr.msk.bf16.mxu0 %vm393_vm2, %v1783_v5  ;;  %v773_v6 = vsel %vm766_vm3, %v770_v57, %v772_v20  ;;  %v4503_v5 = vld [vmem:[%s4151_s25 + $0x14] sm:$0xf] }
  0x4c   : > { %3519 = vmatmul.mubr.msk.bf16.gmra.mrb[24].mxu1 %vm393_vm2, %v392_v29  ;;  %v4516_v29 = vld [vmem:[%s4151_s25 + $0x18] sm:$0xff]  }
  0x4d   : > { %3524 = vmatprep.mubr.msk.bf16.mxu1 %vm393_vm2, %v4161_v9  ;;  %3653 = vmatmul.mubr.msk.bf16.gmra.mrb[8].mxu0 %vm393_vm2, %v1785_v31  ;;  %v1042_v9 = vld [vmem:[%s4847_s1 + $0xc] sm:$0xf] }
  0x4e   : > { %3656 = vmatprep.mubr.msk.bf16.mxu0 %vm393_vm2, %v1787_v33  ;;  %v1156_v22 = vsel %vm436_vm0, %v1042_v9, 0  ;;  %v4051_v33 = vld [vmem:[%s4151_s25 + $0x68] sm:$0xff]  }
  0x54   : > { %3525 = vmatmul.mubr.msk.bf16.vlgmr.msra.gmra.mrb[0].mxu1 %vm393_vm2, %v4164_v10  ;;  %v1792_v10 = vrot.slane %v4401_v42, 1 }
  0x55   : > { %3528 = vmatprep.mubr.msk.bf16.mxu1 %vm393_vm2, %v4179_v19  ;;  %3553 = vmatpush3.bf16.msra.mxu1 %v839_v37  ;;  %v2448_v37 = vshll.u32 %v4516_v29, 16 }
  0x56   : > { %3991 = vmatprep.subr.msk.bf16.mxu1 %vm436_vm0, %v1042_v9  ;;  %3657 = vmatmul.mubr.msk.bf16.gmra.mrb[12].mxu0 %vm393_vm2, %v1789_v40  ;;  %v1793_v47 = vsel %vm766_vm3, %v1790_v36, %v1792_v10  ;;  %v1795_v49 = vsel %vm766_vm3, %v1792_v10, %v1794_v39  ;;  %v784_v9 = vrot.slane %v4277_v46, 1  ;;  %v4528_v40 = vld [vmem:[%s4151_s25 + $0x20] sm:$0xff]  }
  0x57   : > { %3660 = vmatprep.mubr.msk.bf16.mxu0 %vm393_vm2, %v1791_v43  ;;  %v2450_v39 = vrot.slane %v2448_v37, 1  ;;  %v2456_v54 = vshll.u32 %v4528_v40, 16  ;;  %v4061_v37 = vld [vmem:[%s4151_s25 + $0x8] sm:$0xff]  }
  0x5c   : > { %3529 = vmatmul.mubr.msk.bf16.gmra.mrb[4].mxu1 %vm393_vm2, %v4189_v32  ;;  %v774_v32 = vrot.slane %v4208_v48, 1 }
  0x5d   : > { %3532 = vmatprep.mubr.msk.bf16.mxu1 %vm393_vm2, %v4208_v48  ;;  %v4049_v48 = vld [vmem:[%s4151_s25 + $0x58] sm:$0xff]  }
  0x5e   : > { %3661 = vmatmul.mubr.msk.bf16.gmra.mrb[16].mxu0 %vm393_vm2, %v1793_v47  ;;  %v775_v19 = vsel %vm766_vm3, %v772_v20, %v774_v32  ;;  %v777_v57 = vsel %vm766_vm3, %v774_v32, %v776_v8  ;;  %v4533_v47 = vld [vmem:[%s4151_s25 + $0x28] sm:$0xff]   ;;  %v2851_v20 = vsel %vm436_vm0, %v4461_v53, 0 }
  0x5f   : > { %3664 = vmatprep.mubr.msk.bf16.mxu0 %vm393_vm2, %v1795_v49  ;;  %v4053_v49 = vld [vmem:[%s4151_s25 + $0x78] sm:$0xff]   ;;  %v2464_v60 = vshll.u32 %v4533_v47, 16 }
  0x64   : > { %3533 = vmatmul.mubr.msk.bf16.gmra.mrb[8].mxu1 %vm393_vm2, %v4224_v58  ;;  %v4050_v58 = vld [vmem:[%s4151_s25 + $0x60] sm:$0xff]  }
  0x65   : > { %3536 = vmatprep.mubr.msk.bf16.mxu1 %vm393_vm2, %v4244_v14 }
  0x66   : > { %3665 = vmatmul.mubr.msk.bf16.gmra.mrb[20].mxu0 %vm393_vm2, %v1797_v34  ;;  %v786_v34 = vrot.slane %v4295_v4, 1 }
  0x67   : > { %3668 = vmatprep.mubr.msk.bf16.mxu0 %vm393_vm2, %v1799_v59  ;;  %v2460_v59 = vshrl.u32 %v4528_v40, 16 }
  0x6c   : > { %3537 = vmatmul.mubr.msk.bf16.gmra.mrb[12].mxu1 %vm393_vm2, %v4257_v25  ;;  %v782_v25 = vrot.slane %v4272_v41, 1 }
  0x6d   : > { %3540 = vmatprep.mubr.msk.bf16.mxu1 %vm393_vm2, %v4272_v41 }
  0x6e   : > { %3669 = vmatmul.mubr.msk.bf16.gmra.mrb[24].mxu0 %vm393_vm2, %v1801_v62  ;;  %v783_v43 = vsel %vm766_vm3, %v780_v26, %v782_v25  ;;  %v785_v41 = vsel %vm766_vm3, %v782_v25, %v784_v9  ;;  %v788_v62 = vrot.slane %v4301_v17, 1  ;;  %v4589_v25 = vld [vmem:[%s4151_s25 + $0x50] sm:$0xff]  }
  0x6f   : > { %3674 = vmatprep.mubr.msk.bf16.mxu0 %vm393_vm2, %v4039_v63  ;;  %v2458_v63 = vrot.slane %v2456_v54, 1  ;;  %v2508_v54 = vshrl.u32 %v4589_v25, 16 }
  0x74   : > { %3541 = vmatmul.mubr.msk.bf16.gmra.mrb[16].mxu1 %vm393_vm2, %v4277_v46  ;;  %v2452_v46 = vshrl.u32 %v4516_v29, 16 }
  0x75   : > { %3544 = vmatprep.mubr.msk.bf16.mxu1 %vm393_vm2, %v4295_v4  ;;  %v4553_v4 = vld [vmem:[%s4151_s25 + $0x38] sm:$0xff]  }
  0x76   : > { %3675 = vmatmul.mubr.msk.bf16.vlgmr.msra.gmra.mrb[0].mxu0 %vm393_vm2, %v4040_v1  ;;  %v4548_v1 = vld [vmem:[%s4151_s25 + $0x30] sm:$0xff]   ;;  %v2480_v32 = vshll.u32 %v4553_v4, 16 }
  0x77   : > { %3703 = vmatpush3.bf16.msra.mxu0 %v2599_v11  ;;  %3678 = vmatprep.mubr.msk.bf16.mxu0 %vm393_vm2, %v4041_v7  ;;  %v2454_v7 = vor.u32 %v2452_v46, %v2450_v39  ;;  %v787_v11 = vsel %vm766_vm3, %v784_v9, %v786_v34 }
  0x78   : > { %3997 = vmatprep.subr.msk.bf16.mxu0 %vm436_vm0, %v4461_v53 }
  0x7c   : > { %3545 = vmatmul.mubr.msk.bf16.gmra.mrb[20].mxu1 %vm393_vm2, %v4301_v17  ;;  %v2459_v17 = vsel %vm276_vm1, %v2454_v7, %v2458_v63 }
  0x7d   : > { %3548 = vmatprep.mubr.msk.bf16.mxu1 %vm393_vm2, %v4318_v35 }
  0x7e   : > { %3679 = vmatmul.mubr.msk.bf16.gmra.mrb[4].mxu0 %vm393_vm2, %v4042_v12  ;;  %v2462_v12 = vor.u32 %v2460_v59, %v2458_v63  ;;  %v4063_v59 = vld [vmem:[%s4151_s25 + $0x10] sm:$0xff]  }
  0x7f   : > { %3682 = vmatprep.mubr.msk.bf16.mxu0 %vm393_vm2, %v4043_v61  ;;  %v2466_v61 = vrot.slane %v2464_v60, 1 }
  0x84   : > { %3549 = vmatmul.mubr.msk.bf16.gmra.mrb[24].mxu1 %vm393_vm2, %v4323_v38 }
  0x85   : > { %3554 = vmatprep.mubr.msk.bf16.mxu1 %vm393_vm2, %v4369_v52  ;;  %v4048_v52 = vld [vmem:[%s4151_s25 + $0x50] sm:$0xff]  }
  0x86   : > { %3683 = vmatmul.mubr.msk.bf16.gmra.mrb[8].mxu0 %vm393_vm2, %v4044_v15  ;;  %v789_v15 = vsel %vm766_vm3, %v786_v34, %v788_v62  ;;  %v4607_v34 = vld [vmem:[%s4151_s25 + $0x60] sm:$0xff]  }
  0x87   : > { %3686 = vmatprep.mubr.msk.bf16.mxu0 %vm393_vm2, %v4046_v16  ;;  %v2472_v16 = vshll.u32 %v4548_v1, 16 }
  0x8c   : > { %3555 = vmatmul.mubr.msk.bf16.vlgmr.msra.gmra.mrb[0].mxu1 %vm393_vm2, %v4354_v3  ;;  %v2337_v3 = vld [vmem:[%s4151_s25 + $0x10] sm:$0xf] }
  0x8d   : > { %3558 = vmatprep.mubr.msk.bf16.mxu1 %vm393_vm2, %v773_v6  ;;  %3583 = vmatpush3.bf16.msra.mxu1 %v1156_v22  ;;  %v3310_v13 = vcombine.low %v2337_v3, %v4503_v5  ;;  %v2468_v6 = vshrl.u32 %v4533_v47, 16  ;;  %v2467_v22 = vsel %vm276_vm1, %v2462_v12, %v2466_v61  ;;  %v2520_v12 = vshll.u32 %v4607_v34, 16 }
  0x8e   : > { %3993 = vmatprep.subr.msk.bf16.mxu1 %vm436_vm0, %v4123_v0  ;;  %3687 = vmatmul.mubr.msk.bf16.gmra.mrb[12].mxu0 %vm393_vm2, %v4047_v24  ;;  %v778_v0 = vrot.slane %v4244_v14, 1  ;;  %v4052_v14 = vld [vmem:[%s4151_s25 + $0x70] sm:$0xff]   ;;  %v790_v24 = vrot.slane %v4318_v35, 1  ;;  %v2482_v35 = vrot.slane %v2480_v32, 1  ;;  %v4069_v32 = vld [vmem:[%s4151_s25 + $0x28] sm:$0xff]  }
  0x8f   : > { %3690 = vmatprep.mubr.msk.bf16.mxu0 %vm393_vm2, %v4048_v52  ;;  %v2443_v30 = vshll.u32 %v3310_v13, 16  ;;  %v2441_v23 = vshrl.u32 %v3310_v13, 16  ;;  %v2476_v52 = vshrl.u32 %v4548_v1, 16  ;;  %v2470_v53 = vor.u32 %v2468_v6, %v2466_v61 }
  0x90   : > { %v779_v27 = vsel %vm766_vm3, %v776_v8, %v778_v0  ;;  %v781_v31 = vsel %vm766_vm3, %v778_v0, %v780_v26  ;;  %v792_v8 = vrot.slane %v4323_v38, 1  ;;  %v791_v3 = vsel %vm766_vm3, %v788_v62, %v790_v24  ;;  %v4065_v62 = vld [vmem:[%s4151_s25 + $0x18] sm:$0xff]  }
  0x91   : > { %v2445_v36 = vrot.slane %v2443_v30, 1  ;;  %v2484_v26 = vshrl.u32 %v4553_v4, 16  ;;  %v794_v30 = vrot.slane %v4337_v28, 1  ;;  %v4595_v28 = vld [vmem:[%s4151_s25 + $0x58] sm:$0xff]   ;;  %v2522_v6 = vrot.slane %v2520_v12, 1 }
  0x92   : > { %v793_v0 = vsel %vm766_vm3, %v790_v24, %v792_v8  ;;  %v2512_v46 = vshll.u32 %v4595_v28, 16  ;;  %v4067_v24 = vld [vmem:[%s4151_s25 + $0x20] sm:$0xff]  }
  0x93   : > { %v2446_v10 = vor.u32 %v2445_v36, %v2441_v23  ;;  %v2486_v23 = vor.u32 %v2484_v26, %v2482_v35  ;;  %v795_v36 = vsel %vm766_vm3, %v792_v8, %v794_v30  ;;  %v4071_v26 = vld [vmem:[%s4151_s25 + $0x30] sm:$0xff]   ;;  %v4646_v30 = vld [vmem:[%s4151_s25 + $0x80] ss:$0 sps:$4 sm:$0x11]  }
  0x94   : > { %3559 = vmatmul.mubr.msk.bf16.gmra.mrb[4].mxu1 %vm393_vm2, %v775_v19  ;;  %v2474_v19 = vrot.slane %v2472_v16, 1  ;;  %v2514_v7 = vrot.slane %v2512_v46, 1 }
  0x95   : > { %3562 = vmatprep.mubr.msk.bf16.mxu1 %vm393_vm2, %v777_v57  ;;  %v2451_v55 = vsel %vm276_vm1, %v2446_v10, %v2450_v39  ;;  %v4570_v57 = vld [vmem:[%s4151_s25 + $0x40] sm:$0xff]   ;;  %v2504_v10 = vshll.u32 %v4589_v25, 16 }
  0x96   : > { %3691 = vmatmul.mubr.msk.bf16.gmra.mrb[16].mxu0 %vm393_vm2, %v4049_v48  ;;  %v2478_v48 = vor.u32 %v2476_v52, %v2474_v19  ;;  %v2488_v38 = vshll.u32 %v4570_v57, 16  ;;  %v2475_v13 = vsel %vm276_vm1, %v2470_v53, %v2474_v19 }
  0x97   : > { %3694 = vmatprep.mubr.msk.bf16.mxu0 %vm393_vm2, %v4050_v58  ;;  %v4575_v58 = vld [vmem:[%s4151_s25 + $0x48] sm:$0xff]  }
  0x9c   : > { %3563 = vmatmul.mubr.msk.bf16.gmra.mrb[8].mxu1 %vm393_vm2, %v779_v27  ;;  %v2483_v27 = vsel %vm276_vm1, %v2478_v48, %v2482_v35 }
  0x9d   : > { %3566 = vmatprep.mubr.msk.bf16.mxu1 %vm393_vm2, %v781_v31  ;;  %v2492_v31 = vshrl.u32 %v4570_v57, 16 }
  0x9e   : > { %3695 = vmatmul.mubr.msk.bf16.gmra.mrb[20].mxu0 %vm393_vm2, %v4051_v33  ;;  %v2496_v33 = vshll.u32 %v4575_v58, 16 }
  0x9f   : > { %3698 = vmatprep.mubr.msk.bf16.mxu0 %vm393_vm2, %v4052_v14  ;;  %v2490_v14 = vrot.slane %v2488_v38, 1 }
  0xa1   : > { %v2494_v9 = vor.u32 %v2492_v31, %v2490_v14  ;;  %v2491_v39 = vsel %vm276_vm1, %v2486_v23, %v2490_v14  ;;  %v4073_v31 = vld [vmem:[%s4151_s25 + $0x38] sm:$0xff]   ;;  %v2774_v23 = vld [vmem:[%s4151_s25 + $0x10] sm:$0xe] }
  0xa4   : > { %3567 = vmatmul.mubr.msk.bf16.gmra.mrb[12].mxu1 %vm393_vm2, %v783_v43  ;;  %v2498_v43 = vrot.slane %v2496_v33, 1 }
  0xa5   : > { %3570 = vmatprep.mubr.msk.bf16.mxu1 %vm393_vm2, %v785_v41  ;;  %v2500_v41 = vshrl.u32 %v4575_v58, 16 }
  0xa6   : > { %3699 = vmatmul.mubr.msk.bf16.gmra.mrb[24].mxu0 %vm393_vm2, %v4053_v49  ;;  %v2499_v49 = vsel %vm276_vm1, %v2494_v9, %v2498_v43  ;;  %v2552_v9 = vshll.u32 %v4646_v30, 16 }
  0xa7   : > { %3704 = vmatprep.mubr.msk.bf16.mxu0 %vm393_vm2, %v2451_v55  ;;  %v2506_v55 = vrot.slane %v2504_v10, 1  ;;  %v2502_v60 = vor.u32 %v2500_v41, %v2498_v43  ;;  %v3339_v10 = vcombine.low %v2774_v23, %v4503_v5 }
  0xa9   : > { %v2510_v63 = vor.u32 %v2508_v54, %v2506_v55  ;;  %v2507_v61 = vsel %vm276_vm1, %v2502_v60, %v2506_v55  ;;  %v4077_v54 = vld [vmem:[%s4151_s25 + $0x48] sm:$0xff]   ;;  %v2779_v46 = vrot.slane %v3339_v10, 1  ;;  %v2780_v55 = vrot.slane %v4516_v29, 1  ;;  %v4079_v60 = vld [vmem:[%s4151_s25 + $0x50] sm:$0xff]  }
  0xaa   : > { %v2784_v29 = vrot.slane %v4533_v47, 1  ;;  %v1502_v47 = vshrl.u32 %v4282_v50, 16  ;;  %v2790_v50 = vrot.slane %v4570_v57, 1  ;;  %v1546_v10 = vshll.u32 %v4431_v56, 16 }
  0xab   : > { %v2515_v16 = vsel %vm276_vm1, %v2510_v63, %v2514_v7  ;;  %v2781_v5 = vsel %vm766_vm3, %v2779_v46, %v2780_v55  ;;  %v4080_v63 = vld [vmem:[%s4151_s25 + $0x58] sm:$0xff]  }
  0xac   : > { %3571 = vmatmul.mubr.msk.bf16.gmra.mrb[16].mxu1 %vm393_vm2, %v787_v11  ;;  %v4613_v11 = vld [vmem:[%s4151_s25 + $0x68] sm:$0xff]  }
  0xad   : > { %3574 = vmatprep.mubr.msk.bf16.mxu1 %vm393_vm2, %v789_v15  ;;  %v2516_v15 = vshrl.u32 %v4595_v28, 16  ;;  %v2532_v48 = vshrl.u32 %v4613_v11, 16 }
  0xae   : > { %3705 = vmatmul.mubr.msk.bf16.vlgmr.msra.gmra.mrb[0].mxu0 %vm393_vm2, %v2459_v17  ;;  %v2524_v17 = vshrl.u32 %v4607_v34, 16 }
  0xaf   : > { %3733 = vmatpush3.bf16.msra.mxu0 %v2851_v20  ;;  %3708 = vmatprep.mubr.msk.bf16.mxu0 %vm393_vm2, %v2467_v22  ;;  %v2528_v20 = vshll.u32 %v4613_v11, 16  ;;  %v4626_v22 = vld [vmem:[%s4151_s25 + $0x70] sm:$0xff]   ;;  %v2518_v52 = vor.u32 %v2516_v15, %v2514_v7  ;;  %v2786_v15 = vrot.slane %v4548_v1, 1 }
  0xb0   : > { %v2526_v8 = vor.u32 %v2524_v17, %v2522_v6  ;;  %v2536_v53 = vshll.u32 %v4626_v22, 16  ;;  %v1506_v17 = vshll.u32 %v4386_v18, 16  ;;  %v4083_v1 = vld [vmem:[%s4151_s25 + $0x70] sm:$0xff]  }
  0xb1   : > { %v2530_v19 = vrot.slane %v2528_v20, 1  ;;  %v2787_v20 = vsel %vm766_vm3, %v2784_v29, %v2786_v15 }
  0xb3   : > { %v2531_v35 = vsel %vm276_vm1, %v2526_v8, %v2530_v19  ;;  %v2792_v8 = vrot.slane %v4575_v58, 1  ;;  %v1530_v58 = vshll.u32 %v4415_v45, 16 }
  0xb4   : > { %3575 = vmatmul.mubr.msk.bf16.gmra.mrb[20].mxu1 %vm393_vm2, %v791_v3  ;;  %v2523_v3 = vsel %vm276_vm1, %v2518_v52, %v2522_v6  ;;  %v1508_v52 = vrot.slane %v1506_v17, 1 }
  0xb5   : > { %3578 = vmatprep.mubr.msk.bf16.mxu1 %vm393_vm2, %v793_v0  ;;  %v2540_v0 = vshrl.u32 %v4626_v22, 16  ;;  %v2793_v57 = vsel %vm766_vm3, %v2790_v50, %v2792_v8  ;;  %v1532_v23 = vrot.slane %v1530_v58, 1 }
  0xb6   : > { %3709 = vmatmul.mubr.msk.bf16.gmra.mrb[4].mxu0 %vm393_vm2, %v2475_v13  ;;  %v2538_v13 = vrot.slane %v2536_v53, 1  ;;  %v1518_v53 = vshrl.u32 %v4401_v42, 16 }
  0xb7   : > { %3712 = vmatprep.mubr.msk.bf16.mxu0 %vm393_vm2, %v2483_v27  ;;  %v2534_v27 = vor.u32 %v2532_v48, %v2530_v19 }
  0xb8   : > { %v2542_v33 = vor.u32 %v2540_v0, %v2538_v13 }
  0xbc   : > { %3579 = vmatmul.mubr.msk.bf16.gmra.mrb[24].mxu1 %vm393_vm2, %v795_v36  ;;  %v2539_v36 = vsel %vm276_vm1, %v2534_v27, %v2538_v13  ;;  %v2796_v13 = vrot.slane %v4595_v28, 1 }
  0xbd   : > { %3584 = vmatprep.mubr.msk.bf16.mxu1 %vm393_vm2, %v4061_v37 }
  0xbe   : > { %3713 = vmatmul.mubr.msk.bf16.gmra.mrb[8].mxu0 %vm393_vm2, %v2491_v39  ;;  %v4075_v39 = vld [vmem:[%s4151_s25 + $0x40] sm:$0xff]  }
  0xbf   : > { %3716 = vmatprep.mubr.msk.bf16.mxu0 %vm393_vm2, %v2499_v49  ;;  %v2554_v49 = vrot.slane %v2552_v9, 1  ;;  %v2800_v9 = vrot.slane %v4613_v11, 1 }
  0xc4   : > { %3585 = vmatmul.mubr.msk.bf16.vlgmr.msra.gmra.mrb[0].mxu1 %vm393_vm2, %v4063_v59 }
  0xc5   : > { %3588 = vmatprep.mubr.msk.bf16.mxu1 %vm393_vm2, %v4065_v62  ;;  %3763 = vmatpush3.bf16.msra.mxu1 %v4133_v2  ;;  %v4632_v2 = vld [vmem:[%s4151_s25 + $0x78] sm:$0xff]   ;;  %v2782_v62 = vrot.slane %v4528_v40, 1  ;;  %v4082_v40 = vld [vmem:[%s4151_s25 + $0x68] sm:$0xff]  }
  0xc6   : > { %3717 = vmatmul.mubr.msk.bf16.gmra.mrb[12].mxu0 %vm393_vm2, %v2507_v61  ;;  %v2544_v38 = vshll.u32 %v4632_v2, 16  ;;  %v2548_v37 = vshrl.u32 %v4632_v2, 16  ;;  %v4081_v61 = vld [vmem:[%s4151_s25 + $0x60] sm:$0xff]   ;;  %v2804_v11 = vrot.slane %v4632_v2, 1 }
  0xc7   : > { %3720 = vmatprep.mubr.msk.bf16.mxu0 %vm393_vm2, %v2515_v16  ;;  %v2783_v7 = vsel %vm766_vm3, %v2780_v55, %v2782_v62  ;;  %v2785_v12 = vsel %vm766_vm3, %v2782_v62, %v2784_v29  ;;  %v2788_v16 = vrot.slane %v4553_v4, 1  ;;  %v1514_v4 = vshll.u32 %v4401_v42, 16 }
  0xc8   : > { %v2546_v14 = vrot.slane %v2544_v38, 1  ;;  %v2794_v42 = vrot.slane %v4589_v25, 1 }
  0xc9   : > { %v2789_v6 = vsel %vm766_vm3, %v2786_v15, %v2788_v16  ;;  %v1516_v48 = vrot.slane %v1514_v4, 1 }
  0xca   : > { %v2547_v43 = vsel %vm276_vm1, %v2542_v33, %v2546_v14  ;;  %v2550_v41 = vor.u32 %v2548_v37, %v2546_v14  ;;  %v1538_v33 = vshll.u32 %v4424_v51, 16  ;;  %v2795_v14 = vsel %vm766_vm3, %v2792_v8, %v2794_v42 }
  0xcb   : > { %v1520_v0 = vor.u32 %v1518_v53, %v1516_v48  ;;  %v2797_v25 = vsel %vm766_vm3, %v2794_v42, %v2796_v13 }
  0xcc   : > { %3589 = vmatmul.mubr.msk.bf16.gmra.mrb[4].mxu1 %vm393_vm2, %v4067_v24  ;;  %v2555_v59 = vsel %vm276_vm1, %v2550_v41, %v2554_v49  ;;  %v1504_v24 = vor.u32 %v1502_v47, %v4305_v21  ;;  %v1522_v21 = vshll.u32 %v4407_v44, 16  ;;  %v1540_v28 = vrot.slane %v1538_v33, 1 }
  0xcd   : > { %3592 = vmatprep.mubr.msk.bf16.mxu1 %vm393_vm2, %v4069_v32  ;;  %v1510_v32 = vshrl.u32 %v4386_v18, 16 }
  0xce   : > { %3721 = vmatmul.mubr.msk.bf16.gmra.mrb[16].mxu0 %vm393_vm2, %v2523_v3  ;;  %v1509_v19 = vsel %vm276_vm1, %v1504_v24, %v1508_v52  ;;  %v2791_v3 = vsel %vm766_vm3, %v2788_v16, %v2790_v50  ;;  %v1524_v18 = vrot.slane %v1522_v21, 1  ;;  %v4750_v24 = vld [vmem:[%s4848_s2] ss:$0 sm:$0xff] }
  0xcf   : > { %3724 = vmatprep.mubr.msk.bf16.mxu0 %vm393_vm2, %v2531_v35  ;;  %v1512_v35 = vor.u32 %v1510_v32, %v1508_v52 }
  0xd0   : > { %v1525_v27 = vsel %vm276_vm1, %v1520_v0, %v1524_v18 }
  0xd1   : > { %v1517_v38 = vsel %vm276_vm1, %v1512_v35, %v1516_v48 }
  0xd4   : > { %3593 = vmatmul.mubr.msk.bf16.gmra.mrb[8].mxu1 %vm393_vm2, %v4071_v26  ;;  %v1526_v26 = vshrl.u32 %v4407_v44, 16  ;;  %v2798_v44 = vrot.slane %v4607_v34, 1  ;;  %v1548_v34 = vrot.slane %v1546_v10, 1 }
  0xd5   : > { %3596 = vmatprep.mubr.msk.bf16.mxu1 %vm393_vm2, %v4073_v31  ;;  %v1534_v31 = vshrl.u32 %v4415_v45, 16 }
  0xd6   : > { %3725 = vmatmul.mubr.msk.bf16.gmra.mrb[20].mxu0 %vm393_vm2, %v2539_v36  ;;  %v1528_v36 = vor.u32 %v1526_v26, %v1524_v18  ;;  %v2799_v41 = vsel %vm766_vm3, %v2796_v13, %v2798_v44  ;;  %v2801_v49 = vsel %vm766_vm3, %v2798_v44, %v2800_v9 }
  0xd7   : > { %3728 = vmatprep.mubr.msk.bf16.mxu0 %vm393_vm2, %v2547_v43  ;;  %v1536_v37 = vor.u32 %v1534_v31, %v1532_v23  ;;  %v1542_v43 = vshrl.u32 %v4424_v51, 16  ;;  %v2802_v51 = vrot.slane %v4626_v22, 1 }
  0xd8   : > { %v1533_v45 = vsel %vm276_vm1, %v1528_v36, %v1532_v23 }
  0xd9   : > { %v2803_v46 = vsel %vm766_vm3, %v2800_v9, %v2802_v51  ;;  %v2805_v55 = vsel %vm766_vm3, %v2802_v51, %v2804_v11 }
  0xdc   : > { %3597 = vmatmul.mubr.msk.bf16.gmra.mrb[12].mxu1 %vm393_vm2, %v4075_v39  ;;  %v1541_v39 = vsel %vm276_vm1, %v1536_v37, %v1540_v28 }
  0xdd   : > { %3600 = vmatprep.mubr.msk.bf16.mxu1 %vm393_vm2, %v4077_v54  ;;  %v1544_v54 = vor.u32 %v1542_v43, %v1540_v28 }
  0xde   : > { %3729 = vmatmul.mubr.msk.bf16.gmra.mrb[24].mxu0 %vm393_vm2, %v2555_v59  ;;  %v2806_v59 = vrot.slane %v4646_v30, 1 }
  0xdf   : > { %3734 = vmatprep.mubr.msk.bf16.mxu0 %vm393_vm2, %v2781_v5  ;;  %v1549_v56 = vsel %vm276_vm1, %v1544_v54, %v1548_v34 }
  0xe0   : > { %v2807_v5 = vsel %vm766_vm3, %v2804_v11, %v2806_v59 }
  0xe4   : > { %3601 = vmatmul.mubr.msk.bf16.gmra.mrb[16].mxu1 %vm393_vm2, %v4079_v60 }
  0xe5   : > { %3604 = vmatprep.mubr.msk.bf16.mxu1 %vm393_vm2, %v4080_v63 }
  0xe6   : > { %3735 = vmatmul.mubr.msk.bf16.vlgmr.msra.gmra.mrb[0].mxu0 %vm393_vm2, %v2783_v7 }
  0xe7   : > { %3738 = vmatprep.mubr.msk.bf16.mxu0 %vm393_vm2, %v2785_v12 }
  0xec   : > { %3605 = vmatmul.mubr.msk.bf16.gmra.mrb[20].mxu1 %vm393_vm2, %v4081_v61 }
  0xed   : > { %3608 = vmatprep.mubr.msk.bf16.mxu1 %vm393_vm2, %v4082_v40 }
  0xee   : > { %3739 = vmatmul.mubr.msk.bf16.gmra.mrb[4].mxu0 %vm393_vm2, %v2787_v20 }
  0xef   : > { %3742 = vmatprep.mubr.msk.bf16.mxu0 %vm393_vm2, %v2789_v6 }
  0xf4   : > { %3609 = vmatmul.mubr.msk.bf16.gmra.mrb[24].mxu1 %vm393_vm2, %v4083_v1 }
  0xf5   : > { %3630 = vmatprep.mubr.msk.bf16.mxu1 %vm393_vm2, %v1509_v19 }
  0xf6   : > { %3743 = vmatmul.mubr.msk.bf16.gmra.mrb[8].mxu0 %vm393_vm2, %v2791_v3 }
  0xf7   : > { %3746 = vmatprep.mubr.msk.bf16.mxu0 %vm393_vm2, %v2793_v57 }
  0xfc   : > { %3631 = vmatmul.mubr.msk.bf16.vlgmr.msra.gmra.mrb[16].mxu1 %vm393_vm2, %v1517_v38 }
  0xfd   : > { %3634 = vmatprep.mubr.msk.bf16.mxu1 %vm393_vm2, %v1525_v27 }
  0xfe   : > { %3747 = vmatmul.mubr.msk.bf16.gmra.mrb[12].mxu0 %vm393_vm2, %v2795_v14 }
  0xff   : > { %3750 = vmatprep.mubr.msk.bf16.mxu0 %vm393_vm2, %v2797_v25 }
 0x104   : > { %3635 = vmatmul.mubr.msk.bf16.gmra.mrb[20].mxu1 %vm393_vm2, %v1533_v45 }
 0x105   : > { %3638 = vmatprep.mubr.msk.bf16.mxu1 %vm393_vm2, %v1541_v39 }
 0x106   : > { %3751 = vmatmul.mubr.msk.bf16.gmra.mrb[16].mxu0 %vm393_vm2, %v2799_v41 }
 0x107   : > { %3754 = vmatprep.mubr.msk.bf16.mxu0 %vm393_vm2, %v2801_v49 }
 0x10c   : > { %3639 = vmatmul.mubr.msk.bf16.gmra.mrb[24].mxu1 %vm393_vm2, %v1549_v56 }
 0x10e   : > { %3755 = vmatmul.mubr.msk.bf16.gmra.mrb[20].mxu0 %vm393_vm2, %v2803_v46 }
 0x10f   : > { %3758 = vmatprep.mubr.msk.bf16.mxu0 %vm393_vm2, %v2805_v55 }
 0x116   : > { %3759 = vmatmul.mubr.msk.bf16.gmra.mrb[24].mxu0 %vm393_vm2, %v2807_v5 }
 0x197   : > { %v3586_v22 = vpop.f32.mrb[0].mxu1 }
 0x198   : > { %v1192_v60 = vpop.f32.mrb[1].mxu1 }
 0x199   : > { %v3587_v2 = vpop.f32.mrb[2].mxu1 }
 0x19a   : > { %v1195_v62 = vpop.f32.mrb[3].mxu1 }
 0x19f   : > { %v3590_v63 = vpop.f32.mrb[4].mxu1 }
 0x1a0   : > { %v1208_v29 = vpop.f32.mrb[5].mxu1 }
 0x1a1   : > { %v3591_v7 = vpop.f32.mrb[6].mxu1 }
 0x1a2   : > { %v1211_v12 = vpop.f32.mrb[7].mxu1 }
 0x1a7   : > { %v3594_v61 = vpop.f32.mrb[8].mxu1 }
 0x1a8   : > { %v1224_v15 = vpop.f32.mrb[9].mxu1 }
 0x1a9   : > { %v3595_v40 = vpop.f32.mrb[10].mxu1 }
 0x1aa   : > { %v1227_v16 = vpop.f32.mrb[11].mxu1 }
 0x1af   : > { %v3598_v47 = vpop.f32.mrb[12].mxu1 }
 0x1b0   : > { %v1240_v17 = vpop.f32.mrb[13].mxu1 }
 0x1b1   : > { %v4742_v30 = vpop.f32.mrb[14].mxu1 }
 0x1b2   : > { %v4744_v20 = vpop.f32.mrb[15].mxu1 }
 0x1b9   : > { %v3736_v6 = vpop.f32.mrb[0].mxu0 }
 0x1ba   : > { %v3764_v52 = vadd.f32 %v3736_v6, %v3586_v22  ;;  %v2887_v1 = vpop.f32.mrb[1].mxu0 }
 0x1bb   : > { %v3765_v50 = vadd.f32 %v2887_v1, %v1192_v60  ;;  %v3737_v4 = vpop.f32.mrb[2].mxu0 }
 0x1bc   : > { %v3035_v32 = vadd.f32 %v3764_v52, %v4750_v24  ;;  %v3766_v8 = vadd.f32 %v3737_v4, %v3587_v2  ;;  %v2890_v19 = vpop.f32.mrb[3].mxu0 }
 0x1bd   : > { %v3033_v53 = vadd.f32 %v3765_v50, %v4750_v24  ;;  %v3767_v21 = vadd.f32 %v2890_v19, %v1195_v62 }
 0x1be   : > { %3064 = vst.msk [vmem:[%s4755_s16 + $0x10] sm:$0xff] %vm3061_vm4, %v3035_v32  ;;  %v3036_v3 = vadd.f32 %v3766_v8, %v4750_v24 }
 0x1bf   : > { %3062 = vst.msk [vmem:[%s4755_s16] sm:$0xff] %vm3061_vm4, %v3033_v53  ;;  %v3034_v48 = vadd.f32 %v3767_v21, %v4750_v24 }
 0x1c0   : > { %3065 = vst.msk [vmem:[%s4755_s16 + $0x18] sm:$0xff] %vm3061_vm4, %v3036_v3 }
 0x1c1   : > { %3063 = vst.msk [vmem:[%s4755_s16 + $0x8] sm:$0xff] %vm3061_vm4, %v3034_v48  ;;  %v3740_v35 = vpop.f32.mrb[4].mxu0 }
 0x1c2   : > { %v3768_v57 = vadd.f32 %v3740_v35, %v3590_v63  ;;  %v2903_v0 = vpop.f32.mrb[5].mxu0 }
 0x1c3   : > { %v3769_v18 = vadd.f32 %v2903_v0, %v1208_v29  ;;  %v3741_v42 = vpop.f32.mrb[6].mxu0 }
 0x1c4   : > { %v3039_v58 = vadd.f32 %v3768_v57, %v4750_v24  ;;  %v3770_v38 = vadd.f32 %v3741_v42, %v3591_v7  ;;  %v2906_v13 = vpop.f32.mrb[7].mxu0 }
 0x1c5   : > { %v3037_v26 = vadd.f32 %v3769_v18, %v4750_v24  ;;  %v3771_v27 = vadd.f32 %v2906_v13, %v1211_v12 }
 0x1c6   : > { %3068 = vst.msk [vmem:[%s4755_s16 + $0x30] sm:$0xff] %vm3061_vm4, %v3039_v58  ;;  %v3040_v31 = vadd.f32 %v3770_v38, %v4750_v24 }
 0x1c7   : > { %3066 = vst.msk [vmem:[%s4755_s16 + $0x20] sm:$0xff] %vm3061_vm4, %v3037_v26  ;;  %v3038_v33 = vadd.f32 %v3771_v27, %v4750_v24 }
 0x1c8   : > { %3069 = vst.msk [vmem:[%s4755_s16 + $0x38] sm:$0xff] %vm3061_vm4, %v3040_v31 }
 0x1c9   : > { %3067 = vst.msk [vmem:[%s4755_s16 + $0x28] sm:$0xff] %vm3061_vm4, %v3038_v33  ;;  %v3744_v14 = vpop.f32.mrb[8].mxu0 }
 0x1ca   : > { %v3772_v23 = vadd.f32 %v3744_v14, %v3594_v61  ;;  %v2919_v25 = vpop.f32.mrb[9].mxu0 }
 0x1cb   : > { %v3773_v36 = vadd.f32 %v2919_v25, %v1224_v15  ;;  %v3745_v37 = vpop.f32.mrb[10].mxu0 }
 0x1cc   : > { %v3043_v28 = vadd.f32 %v3772_v23, %v4750_v24  ;;  %v3774_v44 = vadd.f32 %v3745_v37, %v3595_v40  ;;  %v2922_v45 = vpop.f32.mrb[11].mxu0 }
 0x1cd   : > { %v3041_v9 = vadd.f32 %v3773_v36, %v4750_v24  ;;  %v3775_v43 = vadd.f32 %v2922_v45, %v1227_v16 }
 0x1ce   : > { %3072 = vst.msk [vmem:[%s4755_s16 + $0x50] sm:$0xff] %vm3061_vm4, %v3043_v28  ;;  %v3044_v10 = vadd.f32 %v3774_v44, %v4750_v24 }
 0x1cf   : > { %v3632_v39 = vpop.f32.mrb[16].mxu1  ;;  %3070 = vst.msk [vmem:[%s4755_s16 + $0x40] sm:$0xff] %vm3061_vm4, %v3041_v9  ;;  %v3042_v41 = vadd.f32 %v3775_v43, %v4750_v24 }
 0x1d0   : > { %v1693_v49 = vpop.f32.mrb[17].mxu1  ;;  %3073 = vst.msk [vmem:[%s4755_s16 + $0x58] sm:$0xff] %vm3061_vm4, %v3044_v10 }
 0x1d1   : > { %v3633_v54 = vpop.f32.mrb[18].mxu1  ;;  %3071 = vst.msk [vmem:[%s4755_s16 + $0x48] sm:$0xff] %vm3061_vm4, %v3042_v41  ;;  %v3748_v34 = vpop.f32.mrb[12].mxu0 }
 0x1d2   : > { %v1696_v51 = vpop.f32.mrb[19].mxu1  ;;  %v3776_v56 = vadd.f32 %v3748_v34, %v3598_v47  ;;  %v2935_v11 = vpop.f32.mrb[13].mxu0 }
 0x1d3   : > { %v3777_v46 = vadd.f32 %v2935_v11, %v1240_v17  ;;  %v3749_v55 = vpop.f32.mrb[14].mxu0 }
 0x1d4   : > { %v3047_v59 = vadd.f32 %v3776_v56, %v4750_v24  ;;  %v3778_v5 = vadd.f32 %v3749_v55, %v4742_v30  ;;  %v2938_v22 = vpop.f32.mrb[15].mxu0 }
 0x1d5   : > { %v3045_v60 = vadd.f32 %v3777_v46, %v4750_v24  ;;  %v3779_v2 = vadd.f32 %v2938_v22, %v4744_v20 }
 0x1d6   : > { %3076 = vst.msk [vmem:[%s4755_s16 + $0x70] sm:$0xff] %vm3061_vm4, %v3047_v59  ;;  %v3048_v62 = vadd.f32 %v3778_v5, %v4750_v24 }
 0x1d7   : > { %v3636_v63 = vpop.f32.mrb[20].mxu1  ;;  %3074 = vst.msk [vmem:[%s4755_s16 + $0x60] sm:$0xff] %vm3061_vm4, %v3045_v60  ;;  %v3046_v29 = vadd.f32 %v3779_v2, %v4750_v24 }
 0x1d8   : > { %v1709_v7 = vpop.f32.mrb[21].mxu1  ;;  %3077 = vst.msk [vmem:[%s4755_s16 + $0x78] sm:$0xff] %vm3061_vm4, %v3048_v62 }
 0x1d9   : > { %v3637_v12 = vpop.f32.mrb[22].mxu1  ;;  %3075 = vst.msk [vmem:[%s4755_s16 + $0x68] sm:$0xff] %vm3061_vm4, %v3046_v29  ;;  %v3752_v61 = vpop.f32.mrb[16].mxu0 }
 0x1da   : > { %v1712_v15 = vpop.f32.mrb[23].mxu1  ;;  %v3780_v40 = vadd.f32 %v3752_v61, %v3632_v39  ;;  %v2951_v16 = vpop.f32.mrb[17].mxu0 }
 0x1db   : > { %v3781_v47 = vadd.f32 %v2951_v16, %v1693_v49  ;;  %v3753_v17 = vpop.f32.mrb[18].mxu0 }
 0x1dc   : > { %v3051_v30 = vadd.f32 %v3780_v40, %v4750_v24  ;;  %v3782_v20 = vadd.f32 %v3753_v17, %v3633_v54  ;;  %v2954_v6 = vpop.f32.mrb[19].mxu0 }
 0x1dd   : > { %v3049_v52 = vadd.f32 %v3781_v47, %v4750_v24  ;;  %v3783_v1 = vadd.f32 %v2954_v6, %v1696_v51 }
 0x1de   : > { %3080 = vst.msk [vmem:[%s4755_s16 + $0x90] sm:$0xff] %vm3061_vm4, %v3051_v30  ;;  %v3052_v50 = vadd.f32 %v3782_v20, %v4750_v24 }
 0x1df   : > { %v3640_v4 = vpop.f32.mrb[24].mxu1  ;;  %3078 = vst.msk [vmem:[%s4755_s16 + $0x80] sm:$0xff] %vm3061_vm4, %v3049_v52  ;;  %v3050_v32 = vadd.f32 %v3783_v1, %v4750_v24 }
 0x1e0   : > { %v1725_v8 = vpop.f32.mrb[25].mxu1  ;;  %3081 = vst.msk [vmem:[%s4755_s16 + $0x98] sm:$0xff] %vm3061_vm4, %v3052_v50 }
 0x1e1   : > { %v3641_v19 = vpop.f32.mrb[26].mxu1  ;;  %3079 = vst.msk [vmem:[%s4755_s16 + $0x88] sm:$0xff] %vm3061_vm4, %v3050_v32  ;;  %v3756_v53 = vpop.f32.mrb[20].mxu0 }
 0x1e2   : > { %v1728_v21 = vpop.f32.mrb[27].mxu1  ;;  %v3784_v3 = vadd.f32 %v3756_v53, %v3636_v63  ;;  %v2967_v48 = vpop.f32.mrb[21].mxu0 }
 0x1e3   : > { %v3785_v35 = vadd.f32 %v2967_v48, %v1709_v7  ;;  %v3757_v57 = vpop.f32.mrb[22].mxu0 }
 0x1e4   : > { %v3055_v0 = vadd.f32 %v3784_v3, %v4750_v24  ;;  %v3786_v18 = vadd.f32 %v3757_v57, %v3637_v12  ;;  %v2970_v42 = vpop.f32.mrb[23].mxu0 }
 0x1e5   : > { %v3053_v58 = vadd.f32 %v3785_v35, %v4750_v24  ;;  %v3787_v38 = vadd.f32 %v2970_v42, %v1712_v15 }
 0x1e6   : > { %3084 = vst.msk [vmem:[%s4755_s16 + $0xb0] sm:$0xff] %vm3061_vm4, %v3055_v0  ;;  %v3056_v13 = vadd.f32 %v3786_v18, %v4750_v24 }
 0x1e7   : > { %3082 = vst.msk [vmem:[%s4755_s16 + $0xa0] sm:$0xff] %vm3061_vm4, %v3053_v58  ;;  %v3054_v26 = vadd.f32 %v3787_v38, %v4750_v24 }
 0x1e8   : > { %3085 = vst.msk [vmem:[%s4755_s16 + $0xb8] sm:$0xff] %vm3061_vm4, %v3056_v13 }
 0x1e9   : > { %3083 = vst.msk [vmem:[%s4755_s16 + $0xa8] sm:$0xff] %vm3061_vm4, %v3054_v26  ;;  %v3760_v27 = vpop.f32.mrb[24].mxu0 }
 0x1ea   : > { %v3788_v31 = vadd.f32 %v3760_v27, %v3640_v4  ;;  %v2983_v33 = vpop.f32.mrb[25].mxu0 }
 0x1eb   : > { %v3789_v14 = vadd.f32 %v2983_v33, %v1725_v8  ;;  %v3761_v23 = vpop.f32.mrb[26].mxu0 }
 0x1ec   : > { %v3059_v25 = vadd.f32 %v3788_v31, %v4750_v24  ;;  %v3790_v36 = vadd.f32 %v3761_v23, %v3641_v19  ;;  %v2986_v37 = vpop.f32.mrb[27].mxu0 }
 0x1ed   : > { %v3057_v28 = vadd.f32 %v3789_v14, %v4750_v24  ;;  %v3791_v44 = vadd.f32 %v2986_v37, %v1728_v21 }
 0x1ee   : > { %3088 = vst.msk [vmem:[%s4755_s16 + $0xd0] sm:$0xff] %vm3061_vm4, %v3059_v25  ;;  %v3060_v45 = vadd.f32 %v3790_v36, %v4750_v24 }
 0x1ef   : > { %3086 = vst.msk [vmem:[%s4755_s16 + $0xc0] sm:$0xff] %vm3061_vm4, %v3057_v28  ;;  %v3058_v9 = vadd.f32 %v3791_v44, %v4750_v24 }
 0x1f0   : > { %3089 = vst.msk [vmem:[%s4755_s16 + $0xd8] sm:$0xff] %vm3061_vm4, %v3060_v45 }
 0x1f1   : > { %3087 = vst.msk [vmem:[%s4755_s16 + $0xc8] sm:$0xff] %vm3061_vm4, %v3058_v9 }
 0x1f2 PF: > { %s13_s12 = sadd.s32 1, %s4090_s12  }
 0x1f3   : > { %p10_p4 = scmp.ge.s32.totalorder %s13_s12, 4  }
 0x1f5   :  { %12 = sbr.rel (!%p10_p4) target bundleno = 1 (0x1), region = 62 }

</bundles_post_ra>
